<compile_context>
chip_gen: v7x
topology: tpu7x:2x2x1
jax: 0.10.0
libtpu: 0.0.40
codegen_flags: <defaults>
</compile_context>

<pallas_src>
import jax
import jax.numpy as jnp
from jax.experimental import pallas as pl
from jax.experimental.pallas import tpu as pltpu


def _round_up(v, m):
    return (v + m - 1) // m * m


def linear_kernel(xT_ref, w_ref, b_ref, o_ref):
    # xT_ref: (K, TB) f32  -- batch on the lane axis
    # w_ref : (N, K)  f32  -- PyTorch nn.Linear weight layout
    # b_ref : (N, 1)  f32
    # o_ref : (N, TB) f32  -- lane-dense output tile
    x = xT_ref[...]
    w = w_ref[...]
    k_dim = x.shape[0]
    acc = jnp.zeros(o_ref.shape, jnp.float32)
    # Unrolled K=10 contraction as VPU FMAs: (N,1)*(1,TB) -> (N,TB) each step.
    for k in range(k_dim):
        acc = acc + w[:, k:k + 1] * x[k:k + 1, :]
    o_ref[...] = (acc + b_ref[...]).astype(o_ref.dtype)


def linear_pallas(x, W, b, *, tb_max=512):
    """x: (B, 10) f32, W: (2, 10) f32 (PyTorch layout), b: (2,) f32 -> (B, 2)."""
    B, K = x.shape
    N = W.shape[0]

    # Lane-dense batch tile: multiple of 128, capped at tb_max.
    tb = min(tb_max, _round_up(B, 128))
    Bp = _round_up(B, tb)

    x_T = x.T                                   # (K, B)
    if Bp != B:
        x_T = jnp.pad(x_T, ((0, 0), (0, Bp - B)))   # zero-pad extra lanes

    y_T = pl.pallas_call(
        linear_kernel,
        out_shape=jax.ShapeDtypeStruct((N, Bp), x.dtype),
        grid_spec=pl.GridSpec(
            grid=(Bp // tb,),
            in_specs=[
                # x^T tile: (10, TB); second-last dim equals full extent (10),
                # last dim is a multiple of 128 -> legal and lane-dense.
                pl.BlockSpec((K, tb), lambda i: (0, i)),
                # Weight / bias: full tiny arrays, same block every step
                # (stay resident, not re-DMA'd).
                pl.BlockSpec((N, K), lambda i: (0, 0)),
                pl.BlockSpec((N, 1), lambda i: (0, 0)),
            ],
            out_specs=pl.BlockSpec((N, tb), lambda i: (0, i)),
        ),
        compiler_params=pltpu.CompilerParams(
            dimension_semantics=("parallel",),   # megacore-shardable on v7x
        ),
    )(x_T, W, b.reshape(N, 1))

    return y_T[:, :B].T                          # (B, N)


if __name__ == "__main__":
    key = jax.random.PRNGKey(0)
    kx, kw, kb, kx2 = jax.random.split(key, 4)

    B, IN, OUT = 8, 10, 2
    # Deterministic "parameters" (PyTorch nn.Linear(10, 2) shapes: W (2,10), b (2,))
    W = jax.random.normal(kw, (OUT, IN), dtype=jnp.float32) * 0.1
    bias = jax.random.normal(kb, (OUT,), dtype=jnp.float32) * 0.1

    # Small-batch case (matches the module's intended usage).
    x = jax.random.normal(kx, (B, IN), dtype=jnp.float32)
    y = jax.block_until_ready(linear_pallas(x, W, bias))
    y_ref = x @ W.T + bias
    assert y.shape == (B, OUT)
    assert jnp.allclose(y, y_ref, atol=1e-5, rtol=1e-5)

    # Larger batch: exercises the tiled 'parallel' grid and padding path.
    B2 = 600
    x2 = jax.random.normal(kx2, (B2, IN), dtype=jnp.float32)
    y2 = jax.block_until_ready(linear_pallas(x2, W, bias))
    y2_ref = x2 @ W.T + bias
    assert y2.shape == (B2, OUT)
    assert jnp.allclose(y2, y2_ref, atol=1e-5, rtol=1e-5)

    print("KERNEL_OK")
</pallas_src>

<mosaic_0001>
module attributes {stable_mosaic.version = 11 : i64} {
  func.func @linear_kernel(%arg0: i32, %arg1: memref<10x128xf32, #tpu.memory_space<vmem>>, %arg2: memref<2x10xf32, #tpu.memory_space<vmem>>, %arg3: memref<2x1xf32, #tpu.memory_space<vmem>>, %arg4: memref<2x128xf32, #tpu.memory_space<vmem>>) attributes {dimension_semantics = [#tpu.dimension_semantics<parallel>], iteration_bounds = array<i64: 1>, scalar_prefetch = 0 : i64, scratch_operands = 0 : i64, tpu.core_type = #tpu.core_type<tc>, window_params = [{transform_indices = @transform_0, window_bounds = array<i64: 10, 128>}, {pipeline_mode = #tpu.pipeline_mode<synchronous>, transform_indices = @transform_1, window_bounds = array<i64: 2, 10>}, {pipeline_mode = #tpu.pipeline_mode<synchronous>, transform_indices = @transform_2, window_bounds = array<i64: 2, 1>}, {transform_indices = @transform_3, window_bounds = array<i64: 2, 128>}]} {
    %c0 = arith.constant 0 : index
    %c0_0 = arith.constant 0 : index
    %0 = vector.load %arg1[%c0, %c0_0] : memref<10x128xf32, #tpu.memory_space<vmem>>, vector<10x128xf32>
    %c0_1 = arith.constant 0 : index
    %c0_2 = arith.constant 0 : index
    %1 = vector.load %arg2[%c0_1, %c0_2] : memref<2x10xf32, #tpu.memory_space<vmem>>, vector<2x10xf32>
    %cst = arith.constant 0.000000e+00 : f32
    %2 = vector.broadcast %cst : f32 to vector<2x128xf32>
    %3 = vector.extract_strided_slice %1 {offsets = [0, 0], sizes = [2, 1], strides = [1, 1]} : vector<2x10xf32> to vector<2x1xf32>
    %4 = vector.extract_strided_slice %0 {offsets = [0, 0], sizes = [1, 128], strides = [1, 1]} : vector<10x128xf32> to vector<1x128xf32>
    %5 = vector.broadcast %3 : vector<2x1xf32> to vector<2x128xf32>
    %6 = vector.broadcast %4 : vector<1x128xf32> to vector<2x128xf32>
    %7 = arith.mulf %5, %6 : vector<2x128xf32>
    %8 = arith.addf %2, %7 : vector<2x128xf32>
    %9 = vector.extract_strided_slice %1 {offsets = [0, 1], sizes = [2, 1], strides = [1, 1]} : vector<2x10xf32> to vector<2x1xf32>
    %10 = vector.extract_strided_slice %0 {offsets = [1, 0], sizes = [1, 128], strides = [1, 1]} : vector<10x128xf32> to vector<1x128xf32>
    %11 = vector.broadcast %9 : vector<2x1xf32> to vector<2x128xf32>
    %12 = vector.broadcast %10 : vector<1x128xf32> to vector<2x128xf32>
    %13 = arith.mulf %11, %12 : vector<2x128xf32>
    %14 = arith.addf %8, %13 : vector<2x128xf32>
    %15 = vector.extract_strided_slice %1 {offsets = [0, 2], sizes = [2, 1], strides = [1, 1]} : vector<2x10xf32> to vector<2x1xf32>
    %16 = vector.extract_strided_slice %0 {offsets = [2, 0], sizes = [1, 128], strides = [1, 1]} : vector<10x128xf32> to vector<1x128xf32>
    %17 = vector.broadcast %15 : vector<2x1xf32> to vector<2x128xf32>
    %18 = vector.broadcast %16 : vector<1x128xf32> to vector<2x128xf32>
    %19 = arith.mulf %17, %18 : vector<2x128xf32>
    %20 = arith.addf %14, %19 : vector<2x128xf32>
    %21 = vector.extract_strided_slice %1 {offsets = [0, 3], sizes = [2, 1], strides = [1, 1]} : vector<2x10xf32> to vector<2x1xf32>
    %22 = vector.extract_strided_slice %0 {offsets = [3, 0], sizes = [1, 128], strides = [1, 1]} : vector<10x128xf32> to vector<1x128xf32>
    %23 = vector.broadcast %21 : vector<2x1xf32> to vector<2x128xf32>
    %24 = vector.broadcast %22 : vector<1x128xf32> to vector<2x128xf32>
    %25 = arith.mulf %23, %24 : vector<2x128xf32>
    %26 = arith.addf %20, %25 : vector<2x128xf32>
    %27 = vector.extract_strided_slice %1 {offsets = [0, 4], sizes = [2, 1], strides = [1, 1]} : vector<2x10xf32> to vector<2x1xf32>
    %28 = vector.extract_strided_slice %0 {offsets = [4, 0], sizes = [1, 128], strides = [1, 1]} : vector<10x128xf32> to vector<1x128xf32>
    %29 = vector.broadcast %27 : vector<2x1xf32> to vector<2x128xf32>
    %30 = vector.broadcast %28 : vector<1x128xf32> to vector<2x128xf32>
    %31 = arith.mulf %29, %30 : vector<2x128xf32>
    %32 = arith.addf %26, %31 : vector<2x128xf32>
    %33 = vector.extract_strided_slice %1 {offsets = [0, 5], sizes = [2, 1], strides = [1, 1]} : vector<2x10xf32> to vector<2x1xf32>
    %34 = vector.extract_strided_slice %0 {offsets = [5, 0], sizes = [1, 128], strides = [1, 1]} : vector<10x128xf32> to vector<1x128xf32>
    %35 = vector.broadcast %33 : vector<2x1xf32> to vector<2x128xf32>
    %36 = vector.broadcast %34 : vector<1x128xf32> to vector<2x128xf32>
    %37 = arith.mulf %35, %36 : vector<2x128xf32>
    %38 = arith.addf %32, %37 : vector<2x128xf32>
    %39 = vector.extract_strided_slice %1 {offsets = [0, 6], sizes = [2, 1], strides = [1, 1]} : vector<2x10xf32> to vector<2x1xf32>
    %40 = vector.extract_strided_slice %0 {offsets = [6, 0], sizes = [1, 128], strides = [1, 1]} : vector<10x128xf32> to vector<1x128xf32>
    %41 = vector.broadcast %39 : vector<2x1xf32> to vector<2x128xf32>
    %42 = vector.broadcast %40 : vector<1x128xf32> to vector<2x128xf32>
    %43 = arith.mulf %41, %42 : vector<2x128xf32>
    %44 = arith.addf %38, %43 : vector<2x128xf32>
    %45 = vector.extract_strided_slice %1 {offsets = [0, 7], sizes = [2, 1], strides = [1, 1]} : vector<2x10xf32> to vector<2x1xf32>
    %46 = vector.extract_strided_slice %0 {offsets = [7, 0], sizes = [1, 128], strides = [1, 1]} : vector<10x128xf32> to vector<1x128xf32>
    %47 = vector.broadcast %45 : vector<2x1xf32> to vector<2x128xf32>
    %48 = vector.broadcast %46 : vector<1x128xf32> to vector<2x128xf32>
    %49 = arith.mulf %47, %48 : vector<2x128xf32>
    %50 = arith.addf %44, %49 : vector<2x128xf32>
    %51 = vector.extract_strided_slice %1 {offsets = [0, 8], sizes = [2, 1], strides = [1, 1]} : vector<2x10xf32> to vector<2x1xf32>
    %52 = vector.extract_strided_slice %0 {offsets = [8, 0], sizes = [1, 128], strides = [1, 1]} : vector<10x128xf32> to vector<1x128xf32>
    %53 = vector.broadcast %51 : vector<2x1xf32> to vector<2x128xf32>
    %54 = vector.broadcast %52 : vector<1x128xf32> to vector<2x128xf32>
    %55 = arith.mulf %53, %54 : vector<2x128xf32>
    %56 = arith.addf %50, %55 : vector<2x128xf32>
    %57 = vector.extract_strided_slice %1 {offsets = [0, 9], sizes = [2, 1], strides = [1, 1]} : vector<2x10xf32> to vector<2x1xf32>
    %58 = vector.extract_strided_slice %0 {offsets = [9, 0], sizes = [1, 128], strides = [1, 1]} : vector<10x128xf32> to vector<1x128xf32>
    %59 = vector.broadcast %57 : vector<2x1xf32> to vector<2x128xf32>
    %60 = vector.broadcast %58 : vector<1x128xf32> to vector<2x128xf32>
    %61 = arith.mulf %59, %60 : vector<2x128xf32>
    %62 = arith.addf %56, %61 : vector<2x128xf32>
    %c0_3 = arith.constant 0 : index
    %c0_4 = arith.constant 0 : index
    %63 = vector.load %arg3[%c0_3, %c0_4] : memref<2x1xf32, #tpu.memory_space<vmem>>, vector<2x1xf32>
    %64 = vector.broadcast %63 : vector<2x1xf32> to vector<2x128xf32>
    %65 = arith.addf %62, %64 : vector<2x128xf32>
    %c0_5 = arith.constant 0 : index
    %c0_6 = arith.constant 0 : index
    %66 = vector.load %arg4[%c0_5, %c0_6] : memref<2x128xf32, #tpu.memory_space<vmem>>, vector<2x128xf32>
    tpu.vector_store %arg4[%c0_5, %c0_6], %65 {strides = array<i32>} : memref<2x128xf32, #tpu.memory_space<vmem>>, vector<2x128xf32>,
    return
  }
  func.func @transform_0(%arg0: i32) -> (i32, i32) {
    %c0_i32 = arith.constant 0 : i32
    %c0_i32_0 = arith.constant 0 : i32
    return %c0_i32, %arg0 : i32, i32
  }
  func.func @transform_1(%arg0: i32) -> (i32, i32) {
    %c0_i32 = arith.constant 0 : i32
    %c0_i32_0 = arith.constant 0 : i32
    %c0_i32_1 = arith.constant 0 : i32
    return %c0_i32, %c0_i32_0 : i32, i32
  }
  func.func @transform_2(%arg0: i32) -> (i32, i32) {
    %c0_i32 = arith.constant 0 : i32
    %c0_i32_0 = arith.constant 0 : i32
    %c0_i32_1 = arith.constant 0 : i32
    return %c0_i32, %c0_i32_0 : i32, i32
  }
  func.func @transform_3(%arg0: i32) -> (i32, i32) {
    %c0_i32 = arith.constant 0 : i32
    %c0_i32_0 = arith.constant 0 : i32
    return %c0_i32, %arg0 : i32, i32
  }
}

</mosaic_0001>

<bundles_post_ra>
// kernel: tpu_custom_call.1
= control target key start
LH: loop header
LB: loop body
LE: loop exit
PB: predicated region body
PF: predicated region fallthrough
CT: control target
= control target key end

     0   :  { %8 = vsyncpa [#allocation3], 0  ;;  %s294_s0 = inlined_call_operand.hbm [shape: f32[10,128], index: 0, kind: input, shape index: {}]   ;;  %s295_s1 = inlined_call_operand.vmem [shape: f32[2,10], index: 1, kind: input, shape index: {}]   ;;  %s296_s2 = inlined_call_operand.vmem [shape: f32[2,1], index: 2, kind: input, shape index: {}]   ;;  %s297_s3 = inlined_call_operand.hbm [shape: f32[2,128], index: 3, kind: output, shape index: {}]  }
   0x1   :  { %9 = vsyncpa [#allocation4], 0  ;;  %s230_s12 = smov [#allocation2]   ;;  %s182_s16 = scalar_lea.hbm %s294_s0, 256 }
   0x2   :  { %s15_s13 = sshll.u32 %s230_s12, 4  ;;  %p183_p0 = scmp.ne.s32.totalorder %s294_s0, %s182_s16  ;;  %s16_s13 = int_to_ptr.vmem [resolvable:$true] %s15_s13 }
   0x3   :  { %p186_p1 = scmp.lt.u32.totalorder %s182_s16, %s294_s0 }
   0x5   :  { %p188_p2 = pnand %p186_p1, %p183_p0 }
   0x7   :  { %191 = shalt.err (!%p188_p2)
}
   0x8   :  { %s192_s21 = scalar_lea.vmem %s16_s13, 256  ;;  %p197_p4 = scmp.lt.s32.totalorder %s16_s13, %s16_s13 }
   0x9   :  { %p193_p3 = scmp.ne.s32.totalorder %s16_s13, %s192_s21  ;;  %p198_p5 = scmp.lt.s32.totalorder %s192_s21, %s192_s21 }
   0xb   :  { %p199_p6 = por %p198_p5, %p197_p4 }
   0xd   :  { %p200_p7 = pnand %p199_p6, %p193_p3 }
   0xf   :  { %203 = shalt.err (!%p200_p7)
}
  0x10   :  { %s231_s22 = smov 128   ;;  %s232_s23 = smov 8  }
  0x11   :  { %21 = dma.hbm_to_vmem [thread:$0]  %s294_s0, 256, %s16_s13, [#allocation3], %s231_s22, %s231_s22, %s232_s23  }
  0x12   :  { %226 = dma.done.wait [#allocation3], 256  }
  0x13   :  { %227 = vsyncadd [#allocation3], 4294967040  ;;  %v233_v0 = vmov 2   ;;  %v234_v1 = vmov 0   ;;  %v31_v2 = vld [vmem:[%s295_s1] sm:$0x3]  ;;  %v37_v12 = vlaneseq }
  0x14   :  { %172 = vset.pattern.permute.xlu1 %v233_v0  ;;  %170 = vset.pattern.permute.xlu0 %v234_v1  ;;  %v235_v3 = vmov 3   ;;  %v236_v4 = vmov 1   ;;  %v237_v5 = vmov 4   ;;  %v238_v6 = vmov 5   ;;  %v133_v11 = vld [vmem:[%s296_s2] sm:$0x3] }
  0x15   :  { %54 = vperm.xlu1 %172, %v31_v2   ;;  %34 = vperm.xlu0 %170, %v31_v2   ;;  %v239_v7 = vmov 6   ;;  %v240_v8 = vmov 8   ;;  %v241_v9 = vmov 7   ;;  %v242_v10 = vmov 9   ;;  %v29_v16 = vld [vmem:[#allocation2] sm:$0xff]  ;;  %s243_s2 = smov [#allocation5]  }
  0x16   :  { %v38_v13 = vshrl.u32 %v37_v12, 7  ;;  %v30_v46 = vld [vmem:[#allocation2 + $0x8] sm:$0x3]  ;;  %s147_s28 = sshll.u32 %s243_s2, 4  ;;  %s148_s28 = int_to_ptr.vmem [resolvable:$true] %s147_s28 }
  0x17   :  { %s204_s29 = scalar_lea.vmem %s148_s28, 32  ;;  %p209_p9 = scmp.lt.s32.totalorder %s148_s28, %s148_s28 }
  0x18   :  { %v39_v14 = vsub.s32 0, %v38_v13  ;;  %v49_v15 = vsub.s32 1, %v38_v13  ;;  %v59_v17 = vsub.s32 2, %v38_v13  ;;  %v69_v21 = vsub.s32 3, %v38_v13  ;;  %p205_p8 = scmp.ne.s32.totalorder %s148_s28, %s204_s29  ;;  %p210_p10 = scmp.lt.s32.totalorder %s204_s29, %s204_s29 }
  0x19   :  { %173 = vset.pattern.permute.xlu1 %v235_v3  ;;  %171 = vset.pattern.permute.xlu0 %v236_v4  ;;  %v79_v23 = vsub.s32 4, %v38_v13  ;;  %v89_v28 = vsub.s32 5, %v38_v13  ;;  %v99_v35 = vsub.s32 6, %v38_v13  ;;  %v109_v44 = vsub.s32 7, %v38_v13 }
  0x1a   :  { %64 = vperm.xlu1 %173, %v31_v2   ;;  %44 = vperm.xlu0 %171, %v31_v2   ;;  %v40_v20 = vrot.slane %v29_v16, %v39_v14  ;;  %v50_v22 = vrot.slane %v29_v16, %v49_v15  ;;  %v60_v24 = vrot.slane %v29_v16, %v59_v17  ;;  %p211_p11 = por %p210_p10, %p209_p9 }
  0x1b   :  { %v70_v29 = vrot.slane %v29_v16, %v69_v21  ;;  %v80_v31 = vrot.slane %v29_v16, %v79_v23  ;;  %v90_v34 = vrot.slane %v29_v16, %v89_v28  ;;  %v100_v43 = vrot.slane %v29_v16, %v99_v35 }
  0x1c   :  { %v110_v50 = vrot.slane %v29_v16, %v109_v44  ;;  %v120_v51 = vrot.slane %v30_v46, %v39_v14  ;;  %v130_v57 = vrot.slane %v30_v46, %v49_v15  ;;  %p212_p12 = pnand %p211_p11, %p205_p8 }
  0x1e   :  { %174 = vset.pattern.permute.xlu1 %v237_v5  ;;  %175 = vset.pattern.permute.xlu0 %v238_v6 }
  0x1f   :  { %74 = vperm.xlu1 %174, %v31_v2   ;;  %84 = vperm.xlu0 %175, %v31_v2  }
  0x23   :  { %176 = vset.pattern.permute.xlu1 %v239_v7  ;;  %178 = vset.pattern.permute.xlu0 %v240_v8 }
  0x24   :  { %94 = vperm.xlu1 %176, %v31_v2   ;;  %114 = vperm.xlu0 %178, %v31_v2  }
  0x28   :  { %177 = vset.pattern.permute.xlu1 %v241_v9  ;;  %181 = vset.pattern.permute.xlu0 %v234_v1 }
  0x29   :  { %104 = vperm.xlu1 %177, %v31_v2  }
  0x2d   :  { %179 = vset.pattern.permute.xlu1 %v242_v10 }
  0x2e   :  { %124 = vperm.xlu1 %179, %v31_v2  }
  0x32   :  { %180 = vset.pattern.permute.xlu1 %v234_v1 }
  0x33   :  { %136 = vperm.xlu1 %180, %v133_v11  }
  0x94   :  { %v55_v18 = vpop.permute.xlu1 %54  ;;  %v35_v19 = vpop.permute.xlu0 %34 }
  0x95   :  { %v41_v25 = vmul.f32 %v40_v20, %v35_v19  ;;  %v61_v32 = vmul.f32 %v60_v24, %v55_v18 }
  0x99   :  { %v65_v26 = vpop.permute.xlu1 %64  ;;  %v45_v27 = vpop.permute.xlu0 %44 }
  0x9a   :  { %v51_v30 = vmul.f32 %v50_v22, %v45_v27  ;;  %v71_v36 = vmul.f32 %v70_v29, %v65_v26 }
  0x9c   :  { %v52_v33 = vadd.f32 %v51_v30, %v41_v25 }
  0x9e   :  { %v62_v37 = vadd.f32 %v61_v32, %v52_v33  ;;  %v75_v38 = vpop.permute.xlu1 %74  ;;  %v85_v39 = vpop.permute.xlu0 %84 }
  0x9f   :  { %v81_v40 = vmul.f32 %v80_v31, %v75_v38  ;;  %v91_v42 = vmul.f32 %v90_v34, %v85_v39 }
  0xa0   :  { %v72_v41 = vadd.f32 %v71_v36, %v62_v37 }
  0xa2   :  { %v82_v45 = vadd.f32 %v81_v40, %v72_v41 }
  0xa3   :  { %v95_v47 = vpop.permute.xlu1 %94  ;;  %v115_v52 = vpop.permute.xlu0 %114 }
  0xa4   :  { %v92_v48 = vadd.f32 %v91_v42, %v82_v45  ;;  %v101_v49 = vmul.f32 %v100_v43, %v95_v47  ;;  %v121_v56 = vmul.f32 %v120_v51, %v115_v52 }
  0xa6   :  { %v102_v54 = vadd.f32 %v101_v49, %v92_v48 }
  0xa8   :  { %v105_v53 = vpop.permute.xlu1 %104 }
  0xa9   :  { %v111_v55 = vmul.f32 %v110_v50, %v105_v53 }
  0xab   :  { %v112_v58 = vadd.f32 %v111_v55, %v102_v54 }
  0xad   :  { %v122_v59 = vadd.f32 %v121_v56, %v112_v58  ;;  %v125_v60 = vpop.permute.xlu1 %124 }
  0xae   :  { %v131_v61 = vmul.f32 %v130_v57, %v125_v60 }
  0xb0   :  { %v132_v62 = vadd.f32 %v131_v61, %v122_v59 }
  0xb2   :  { %v137_v63 = vpop.permute.xlu1 %136 }
  0xb3   :  { %v139_v0 = vadd.f32 %v137_v63, %v132_v62 }
  0xb5   :  { %140 = vst [vmem:[#allocation5] sm:$0x3] %v139_v0 }
  0xb6   :  { %215 = shalt.err (!%p212_p12)
}
  0xb7   :  { %s216_s5 = scalar_lea.hbm %s297_s3, 32 }
  0xb8   :  { %p217_p13 = scmp.ne.s32.totalorder %s297_s3, %s216_s5  ;;  %p220_p0 = scmp.lt.u32.totalorder %s216_s5, %s297_s3 }
  0xba   :  { %p222_p1 = pnand %p220_p0, %p217_p13 }
  0xbc   :  { %225 = shalt.err (!%p222_p1)
}
  0xbd   :  { %150 = dma.vmem_to_hbm [thread:$0]  %s148_s28, 32, %s297_s3, [#allocation4]  }
  0xbe   :  { %228 = dma.done.wait [#allocation4], 32  }
  0xbf   :  { %229 = vsyncadd [#allocation4], 4294967264 }
  0xc0   :  { %154 = vsyncpa [#allocation3], 1 }
  0xc1   :  { %155 = vsyncpa [#allocation4], 1 }

</bundles_post_ra>
